<compile_context>
chip_gen: v7x
topology: tpu7x:2x2x1
jax: 0.10.0
libtpu: 0.0.40
codegen_flags: <defaults>
</compile_context>

<pallas_src>
import functools
import math

import jax
import jax.numpy as jnp
from jax.experimental import pallas as pl
from jax.experimental.pallas import tpu as pltpu

_LANE = 128


# ----------------------------------------------------------------------------- helpers
def _round_up(x, m):
    return (x + m - 1) // m * m


def _sublane(dtype):
    return 16 if jnp.dtype(dtype) == jnp.dtype(jnp.bfloat16) else 8


def _row_plan(m, sub, cap):
    """Row tile (multiple of `sub`, <= cap, >=2 grid steps when possible) + padded rows."""
    t = min(_round_up(m, sub), cap)
    if _round_up(m, sub) // t < 2 and m > sub:
        t = max(sub, _round_up((m + 1) // 2, sub))
    return t, _round_up(m, t)


def _vmem_ceiling():
    try:
        cap = int(pltpu.get_tpu_info().vmem_capacity_bytes)
    except Exception:
        cap = 128 << 20
    # Leave headroom for Mosaic internal scratch / semaphores
    # (v5e/v6e: 128MiB -> ~112MiB usable, v7x: 64MiB -> ~48MiB usable).
    return max(cap - (16 << 20), 32 << 20)


def _params(dim_sems, block_bytes):
    limit = int(min(max(int(block_bytes) + (8 << 20), 32 << 20), _vmem_ceiling()))
    return pltpu.CompilerParams(dimension_semantics=dim_sems, vmem_limit_bytes=limit)


@functools.lru_cache(maxsize=None)
def _single_buffer_ok():
    """Probe whether single-buffered (VMEM-resident) weight blocks are supported."""
    if not hasattr(pl, "Buffered"):
        return False
    try:
        def _copy(a_ref, o_ref):
            o_ref[...] = a_ref[...]

        f = pl.pallas_call(
            _copy,
            out_shape=jax.ShapeDtypeStruct((16, _LANE), jnp.float32),
            grid=(2,),
            in_specs=[pl.BlockSpec((8, _LANE), lambda i: (0, 0),
                                   pipeline_mode=pl.Buffered(1))],
            out_specs=pl.BlockSpec((8, _LANE), lambda i: (i, 0)),
        )
        jax.block_until_ready(f(jnp.zeros((8, _LANE), jnp.float32)))
        return True
    except Exception:
        return False


def _const_spec(shape):
    """BlockSpec for a weight/bias that stays VMEM-resident across grid steps."""
    index_map = lambda *_: (0,) * len(shape)
    if _single_buffer_ok():
        return pl.BlockSpec(shape, index_map, pipeline_mode=pl.Buffered(1))
    return pl.BlockSpec(shape, index_map)


# ----------------------------------------------------------------------------- kernels
def _linear_kernel(x_ref, w_ref, b_ref, o_ref):
    acc = jnp.dot(x_ref[...], w_ref[...], preferred_element_type=jnp.float32)
    o_ref[...] = (acc + b_ref[...]).astype(o_ref.dtype)


def _attn_kernel(q_ref, kv_ref, o_ref, *, n_heads, dh, hp, scale, kv_valid):
    # q_ref: (1, TQ, Hp); kv_ref: (1, Lkp, 2*Hp) with [:, :Hp]=K and [:, Hp:]=V.
    q = q_ref[0]
    kv = kv_ref[0]
    lkp = kv.shape[0]
    heads = []
    for h in range(n_heads):                       # static loop; head split in-kernel
        lo = h * dh
        qh = q[:, lo:lo + dh]
        kh = kv[:, lo:lo + dh]
        vh = kv[:, hp + lo:hp + lo + dh]
        s = jax.lax.dot_general(qh, kh, (((1,), (1,)), ((), ())),
                                preferred_element_type=jnp.float32) * scale
        if kv_valid < lkp:                         # mask zero-padded keys
            cols = jax.lax.broadcasted_iota(jnp.int32, s.shape, 1)
            s = jnp.where(cols < kv_valid, s, -1e30)
        m = jnp.max(s, axis=-1, keepdims=True)
        p = jnp.exp(s - m)
        l = jnp.sum(p, axis=-1, keepdims=True)
        # TODO(synk): attention-weight Dropout(p=0.1) is identity at inference.
        o = jnp.dot(p.astype(vh.dtype), vh, preferred_element_type=jnp.float32)
        heads.append(o * pl.reciprocal(l, approx=True))   # divide -> EUP slot
    if hp > n_heads * dh:
        heads.append(jnp.zeros((q.shape[0], hp - n_heads * dh), jnp.float32))
    o_ref[0] = jnp.concatenate(heads, axis=-1).astype(o_ref.dtype)


def _ln(z, g, b, mask, inv_n, eps):
    zm = jnp.where(mask, z, 0.0)
    mean = jnp.sum(zm, axis=-1, keepdims=True) * inv_n
    cen = jnp.where(mask, z - mean, 0.0)
    var = jnp.sum(cen * cen, axis=-1, keepdims=True) * inv_n
    return cen * jax.lax.rsqrt(var + eps) * g + b


def _outproj_res_ln_kernel(a_ref, x_ref, w_ref, bw_ref, g_ref, b_ref, o_ref, *,
                           n_valid, eps, prenorm):
    y = jnp.dot(a_ref[...], w_ref[...], preferred_element_type=jnp.float32) + bw_ref[...]
    x = x_ref[...].astype(jnp.float32)
    z = y if prenorm else x + y
    mask = jax.lax.broadcasted_iota(jnp.int32, z.shape, 1) < n_valid
    ln = _ln(z, g_ref[...], b_ref[...], mask, 1.0 / n_valid, eps)
    o_ref[...] = ((x + ln) if prenorm else ln).astype(o_ref.dtype)


def _ffn_res_ln_kernel(x_ref, w1_ref, b1_ref, w2_ref, b2_ref, g_ref, b_ref, o_ref, *,
                       n_valid, eps, prenorm):
    xc = x_ref[...]
    h = jnp.dot(xc, w1_ref[...], preferred_element_type=jnp.float32) + b1_ref[...]
    h = h * jax.nn.sigmoid(h)                                   # SiLU
    y = jnp.dot(h.astype(w2_ref.dtype), w2_ref[...],
                preferred_element_type=jnp.float32) + b2_ref[...]
    # TODO(synk): FFN Dropout(p=0.1) is identity at inference.
    x = xc.astype(jnp.float32)
    z = y if prenorm else x + y
    mask = jax.lax.broadcasted_iota(jnp.int32, z.shape, 1) < n_valid
    ln = _ln(z, g_ref[...], b_ref[...], mask, 1.0 / n_valid, eps)
    o_ref[...] = ((x + ln) if prenorm else ln).astype(o_ref.dtype)


# ----------------------------------------------------------------------------- wrappers
def _linear(x, w, b, *, tm, out_dtype):
    Mp, Kp = x.shape
    Np = w.shape[1]
    isz = jnp.dtype(x.dtype).itemsize
    wbuf = 1 if _single_buffer_ok() else 2
    blk = 2 * (tm * Kp + tm * Np) * isz + wbuf * (Kp * Np * isz + Np * 4)
    return pl.pallas_call(
        _linear_kernel,
        out_shape=jax.ShapeDtypeStruct((Mp, Np), out_dtype),
        grid=(Mp // tm,),
        in_specs=[pl.BlockSpec((tm, Kp), lambda i: (i, 0)),
                  _const_spec((Kp, Np)),
                  _const_spec((1, Np))],
        out_specs=pl.BlockSpec((tm, Np), lambda i: (i, 0)),
        compiler_params=_params(("parallel",), blk),
        cost_estimate=pl.CostEstimate(
            flops=int(2 * Mp * Kp * Np), transcendentals=0,
            bytes_accessed=int((Mp * Kp + Mp * Np + Kp * Np) * isz + Np * 4)),
    )(x, w, b)


def _attention(q3, kv3, *, n_heads, dh, scale, kv_valid, q_tile, out_dtype):
    B, Tqp, Hp = q3.shape
    Lkp = kv3.shape[1]
    isz = jnp.dtype(q3.dtype).itemsize
    blk = 2 * (2 * q_tile * Hp + 2 * Lkp * Hp) * isz + 4 * q_tile * Lkp * n_heads
    kernel = functools.partial(_attn_kernel, n_heads=n_heads, dh=dh, hp=Hp,
                               scale=scale, kv_valid=kv_valid)
    return pl.pallas_call(
        kernel,
        out_shape=jax.ShapeDtypeStruct((B, Tqp, Hp), out_dtype),
        grid=(B, Tqp // q_tile),
        in_specs=[pl.BlockSpec((1, q_tile, Hp), lambda b, i: (b, i, 0)),
                  pl.BlockSpec((1, Lkp, 2 * Hp), lambda b, i: (b, 0, 0))],
        out_specs=pl.BlockSpec((1, q_tile, Hp), lambda b, i: (b, i, 0)),
        compiler_params=_params(("parallel", "parallel"), blk),
        cost_estimate=pl.CostEstimate(
            flops=int(4 * B * Tqp * Lkp * n_heads * dh),
            transcendentals=int(B * Tqp * Lkp * n_heads),
            bytes_accessed=int((2 * B * Tqp * Hp + 2 * B * Lkp * Hp) * isz)),
    )(q3, kv3)


def _outproj_res_ln(attn, x, w, bw, g, b, *, tm, n_valid, eps, prenorm, out_dtype):
    Mp, Hp = x.shape
    isz = jnp.dtype(x.dtype).itemsize
    wbuf = 1 if _single_buffer_ok() else 2
    blk = 2 * 3 * tm * Hp * isz + wbuf * (Hp * Hp * isz + 3 * Hp * 4)
    kernel = functools.partial(_outproj_res_ln_kernel, n_valid=n_valid, eps=eps,
                               prenorm=prenorm)
    return pl.pallas_call(
        kernel,
        out_shape=jax.ShapeDtypeStruct((Mp, Hp), out_dtype),
        grid=(Mp // tm,),
        in_specs=[pl.BlockSpec((tm, Hp), lambda i: (i, 0)),
                  pl.BlockSpec((tm, Hp), lambda i: (i, 0)),
                  _const_spec((Hp, Hp)),
                  _const_spec((1, Hp)),
                  _const_spec((1, Hp)),
                  _const_spec((1, Hp))],
        out_specs=pl.BlockSpec((tm, Hp), lambda i: (i, 0)),
        compiler_params=_params(("parallel",), blk),
        cost_estimate=pl.CostEstimate(
            flops=int(2 * Mp * Hp * Hp + 10 * Mp * Hp),
            transcendentals=int(Mp),
            bytes_accessed=int((3 * Mp * Hp + Hp * Hp) * isz)),
    )(attn, x, w, bw, g, b)


def _ffn_res_ln(x, w1, b1, w2, b2, g, b, *, tm, n_valid, eps, prenorm, out_dtype):
    Mp, Hp = x.shape
    Fp = w1.shape[1]
    isz = jnp.dtype(x.dtype).itemsize
    wbuf = 1 if _single_buffer_ok() else 2
    blk = (2 * 2 * tm * Hp * isz + 4 * tm * Fp
           + wbuf * (2 * Hp * Fp * isz + (Fp + 3 * Hp) * 4))
    # TODO(synk): for very large n_hidden (esp. v7x's 64 MiB VMEM) add a K-tiled
    # reduction grid axis + f32 accumulator instead of fully-resident FFN weights.
    kernel = functools.partial(_ffn_res_ln_kernel, n_valid=n_valid, eps=eps,
                               prenorm=prenorm)
    return pl.pallas_call(
        kernel,
        out_shape=jax.ShapeDtypeStruct((Mp, Hp), out_dtype),
        grid=(Mp // tm,),
        in_specs=[pl.BlockSpec((tm, Hp), lambda i: (i, 0)),
                  _const_spec((Hp, Fp)),
                  _const_spec((1, Fp)),
                  _const_spec((Fp, Hp)),
                  _const_spec((1, Hp)),
                  _const_spec((1, Hp)),
                  _const_spec((1, Hp))],
        out_specs=pl.BlockSpec((tm, Hp), lambda i: (i, 0)),
        compiler_params=_params(("parallel",), blk),
        cost_estimate=pl.CostEstimate(
            flops=int(4 * Mp * Hp * Fp + 12 * Mp * Hp),
            transcendentals=int(Mp * Fp + Mp),
            bytes_accessed=int((2 * Mp * Hp + 2 * Hp * Fp) * isz)),
    )(x, w1, b1, w2, b2, g, b)


# ----------------------------------------------------------------------------- block
def cross_attention_block(x, adj, params, *, n_heads, norm_position="prenorm",
                          compute_dtype=jnp.float32, eps=1e-5):
    """Pallas forward of CrossAttentionBlock (inference; dropout = identity)."""
    B, Tr, S, H = x.shape
    E = adj.shape[-1]
    La = math.prod(adj.shape[1:-1])
    Tq = Tr * S
    dh = H // n_heads
    scale = 1.0 / math.sqrt(dh)
    prenorm = (norm_position == "prenorm")
    cdt = jnp.dtype(compute_dtype)
    sub = _sublane(cdt)
    cap = 512 if cdt == jnp.dtype(jnp.bfloat16) else 256

    # lane-dense padded feature widths (head_dim itself is NOT padded)
    Hp = _round_up(H, _LANE)
    Ep = _round_up(E, _LANE)
    Fp = _round_up(2 * H, _LANE)

    # row plans: per-batch query length; kv length padded only to sublane granularity
    tq_tile, Tqp = _row_plan(Tq, sub, cap)
    Lap = _round_up(La, sub)
    Mq = B * Tqp
    Mkv = B * Lap
    tma, Mkvp = _row_plan(Mkv, sub, cap)
    tm = tq_tile                          # divides Mq by construction

    # ---- pad / cast activations (per-batch row pad so q & kv stay aligned) ----
    x3 = jnp.pad(x.reshape(B, Tq, H).astype(cdt),
                 ((0, 0), (0, Tqp - Tq), (0, Hp - H)))
    x2 = x3.reshape(Mq, Hp)
    a3 = jnp.pad(adj.reshape(B, La, E).astype(cdt),
                 ((0, 0), (0, Lap - La), (0, Ep - E)))
    a2 = a3.reshape(Mkv, Ep)
    if Mkvp > Mkv:
        a2 = jnp.pad(a2, ((0, Mkvp - Mkv), (0, 0)))

    # ---- pad / cast weights (wk|wv fused so adj is read once) ----
    f32 = jnp.float32

    def pw(w, rows, cols):
        return jnp.pad(w.astype(f32),
                       ((0, rows - w.shape[0]), (0, cols - w.shape[1]))).astype(cdt)

    def pb(v, cols):
        return jnp.pad(v.astype(f32), (0, cols - v.shape[0])).reshape(1, cols)

    wq, bq = pw(params["wq"], Hp, Hp), pb(params["bq"], Hp)
    wkv = jnp.zeros((Ep, 2 * Hp), f32)
    wkv = wkv.at[:E, :H].set(params["wk"].astype(f32))
    wkv = wkv.at[:E, Hp:Hp + H].set(params["wv"].astype(f32))
    wkv = wkv.astype(cdt)
    bkv = jnp.zeros((1, 2 * Hp), f32)
    bkv = bkv.at[0, :H].set(params["bk"].astype(f32))
    bkv = bkv.at[0, Hp:Hp + H].set(params["bv"].astype(f32))
    wo, bo = pw(params["wo"], Hp, Hp), pb(params["bo"], Hp)
    w1, b1 = pw(params["w1"], Hp, Fp), pb(params["b1"], Fp)
    w2, b2 = pw(params["w2"], Fp, Hp), pb(params["b2"], Hp)
    g1, be1 = pb(params["g1"], Hp), pb(params["be1"], Hp)
    g2, be2 = pb(params["g2"], Hp), pb(params["be2"], Hp)

    # ---- q projection and fused k|v projection ----
    q2 = _linear(x2, wq, bq, tm=tm, out_dtype=cdt)                 # (Mq, Hp)
    kv2 = _linear(a2, wkv, bkv, tm=tma, out_dtype=cdt)             # (Mkvp, 2Hp)

    # free reshapes only; the head split happens inside the attention kernel
    q3 = q2.reshape(B, Tqp, Hp)
    kv3 = kv2[:Mkv].reshape(B, Lap, 2 * Hp)

    attn3 = _attention(q3, kv3, n_heads=n_heads, dh=dh, scale=scale,
                       kv_valid=La, q_tile=tq_tile, out_dtype=cdt)  # (B, Tqp, Hp)

    # ---- out-projection + residual + LayerNorm1 (fused) ----
    x1 = _outproj_res_ln(attn3.reshape(Mq, Hp), x2, wo, bo, g1, be1,
                         tm=tm, n_valid=H, eps=eps, prenorm=prenorm, out_dtype=cdt)

    # ---- FFN (SiLU) + residual + LayerNorm2 (fused) ----
    out2 = _ffn_res_ln(x1, w1, b1, w2, b2, g2, be2,
                       tm=tm, n_valid=H, eps=eps, prenorm=prenorm,
                       out_dtype=jnp.float32)

    out = out2.reshape(B, Tqp, Hp)[:, :Tq, :H]
    return out.reshape(B, Tr, S, H).astype(x.dtype)


# ----------------------------------------------------------------------------- init / reference
def init_params(key, n_heads, n_hidden, n_embd):
    ks = jax.random.split(key, 16)

    def lin(kw, kb, fan_in, fan_out):
        bound = 1.0 / math.sqrt(fan_in)
        w = jax.random.uniform(kw, (fan_in, fan_out), jnp.float32, -bound, bound)
        b = jax.random.uniform(kb, (fan_out,), jnp.float32, -bound, bound)
        return w, b

    wq, bq = lin(ks[0], ks[1], n_hidden, n_hidden)
    wk, bk = lin(ks[2], ks[3], n_embd, n_hidden)
    wv, bv = lin(ks[4], ks[5], n_embd, n_hidden)
    wo, bo = lin(ks[6], ks[7], n_hidden, n_hidden)
    w1, b1 = lin(ks[8], ks[9], n_hidden, 2 * n_hidden)
    w2, b2 = lin(ks[10], ks[11], 2 * n_hidden, n_hidden)
    g1 = 1.0 + 0.1 * jax.random.normal(ks[12], (n_hidden,), jnp.float32)
    be1 = 0.1 * jax.random.normal(ks[13], (n_hidden,), jnp.float32)
    g2 = 1.0 + 0.1 * jax.random.normal(ks[14], (n_hidden,), jnp.float32)
    be2 = 0.1 * jax.random.normal(ks[15], (n_hidden,), jnp.float32)
    return dict(wq=wq, bq=bq, wk=wk, bk=bk, wv=wv, bv=bv, wo=wo, bo=bo,
                w1=w1, b1=b1, w2=w2, b2=b2, g1=g1, be1=be1, g2=g2, be2=be2)


def _reference(x, adj, p, n_heads, norm_position="prenorm", eps=1e-5):
    B, Tr, S, H = x.shape
    dh = H // n_heads
    hi = jax.lax.Precision.HIGHEST

    def mm(a, b):
        return jnp.einsum("...i,ij->...j", a, b, precision=hi)

    def ln(z, g, b):
        mu = jnp.mean(z, axis=-1, keepdims=True)
        var = jnp.mean((z - mu) ** 2, axis=-1, keepdims=True)
        return (z - mu) / jnp.sqrt(var + eps) * g + b

    q = mm(x, p["wq"]) + p["bq"]
    k = mm(adj, p["wk"]) + p["bk"]
    v = mm(adj, p["wv"]) + p["bv"]
    q = q.reshape(B, -1, n_heads, dh).transpose(0, 2, 1, 3)
    k = k.reshape(B, -1, n_heads, dh).transpose(0, 2, 1, 3)
    v = v.reshape(B, -1, n_heads, dh).transpose(0, 2, 1, 3)
    w = jnp.einsum("bhqd,bhkd->bhqk", q, k, precision=hi) / math.sqrt(dh)
    w = jax.nn.softmax(w, axis=-1)
    o = jnp.einsum("bhqk,bhkd->bhqd", w, v, precision=hi)
    o = o.transpose(0, 2, 1, 3).reshape(B, Tr, S, H)
    o = mm(o, p["wo"]) + p["bo"]

    def ffd(z):
        h = mm(z, p["w1"]) + p["b1"]
        h = h * jax.nn.sigmoid(h)
        return mm(h, p["w2"]) + p["b2"]

    if norm_position == "prenorm":
        x = x + ln(o, p["g1"], p["be1"])
        x = x + ln(ffd(x), p["g2"], p["be2"])
    else:
        x = ln(x + o, p["g1"], p["be1"])
        x = ln(x + ffd(x), p["g2"], p["be2"])
    return x


# ----------------------------------------------------------------------------- test
if __name__ == "__main__":
    key = jax.random.PRNGKey(0)
    kx, ka, kp = jax.random.split(key, 3)

    B, Tr, S = 2, 2, 4                 # batch, trajectory_num, sequence_length
    n_heads, n_hidden, n_embd = 4, 64, 32
    La = 6                             # number of 'adj' tokens per batch

    x = jax.random.normal(kx, (B, Tr, S, n_hidden), jnp.float32)
    adj = jax.random.normal(ka, (B, La, n_embd), jnp.float32)
    params = init_params(kp, n_heads, n_hidden, n_embd)

    out = jax.block_until_ready(
        cross_attention_block(x, adj, params, n_heads=n_heads))
    ref = _reference(x, adj, params, n_heads)
    assert out.shape == x.shape
    err = float(jnp.max(jnp.abs(out - ref)))
    assert err < 5e-2, f"max abs err {err}"

    # Exercise the bf16-operand (f32-accumulate) MXU path as well.
    out_bf16 = jax.block_until_ready(
        cross_attention_block(x, adj, params, n_heads=n_heads,
                              compute_dtype=jnp.bfloat16))
    assert out_bf16.shape == x.shape and bool(jnp.all(jnp.isfinite(out_bf16)))

    print("KERNEL_OK")
</pallas_src>

<mosaic_0001>
module attributes {stable_mosaic.version = 11 : i64} {
  func.func @_copy(%arg0: i32, %arg1: memref<8x128xf32, #tpu.memory_space<vmem>>, %arg2: memref<8x128xf32, #tpu.memory_space<vmem>>) attributes {dimension_semantics = [#tpu.dimension_semantics<arbitrary>], iteration_bounds = array<i64: 2>, scalar_prefetch = 0 : i64, scratch_operands = 0 : i64, tpu.core_type = #tpu.core_type<tc>, window_params = [{pipeline_mode = #tpu.pipeline_mode<synchronous>, transform_indices = @transform_0, window_bounds = array<i64: 8, 128>}, {transform_indices = @transform_1, window_bounds = array<i64: 8, 128>}]} {
    %c0 = arith.constant 0 : index
    %c0_0 = arith.constant 0 : index
    %0 = vector.load %arg1[%c0, %c0_0] : memref<8x128xf32, #tpu.memory_space<vmem>>, vector<8x128xf32>
    %c0_1 = arith.constant 0 : index
    %c0_2 = arith.constant 0 : index
    %1 = vector.load %arg2[%c0_1, %c0_2] : memref<8x128xf32, #tpu.memory_space<vmem>>, vector<8x128xf32>
    tpu.vector_store %arg2[%c0_1, %c0_2], %0 {strides = array<i32>} : memref<8x128xf32, #tpu.memory_space<vmem>>, vector<8x128xf32>,
    return
  }
  func.func @transform_0(%arg0: i32) -> (i32, i32) {
    %c0_i32 = arith.constant 0 : i32
    %c0_i32_0 = arith.constant 0 : i32
    %c0_i32_1 = arith.constant 0 : i32
    return %c0_i32, %c0_i32_0 : i32, i32
  }
  func.func @transform_1(%arg0: i32) -> (i32, i32) {
    %c0_i32 = arith.constant 0 : i32
    %c0_i32_0 = arith.constant 0 : i32
    return %arg0, %c0_i32 : i32, i32
  }
}

module attributes {stable_mosaic.version = 11 : i64} {
  func.func @_linear_kernel(%arg0: i32, %arg1: memref<8x128xf32, #tpu.memory_space<vmem>>, %arg2: memref<128x128xf32, #tpu.memory_space<vmem>>, %arg3: memref<1x128xf32, #tpu.memory_space<vmem>>, %arg4: memref<8x128xf32, #tpu.memory_space<vmem>>) attributes {dimension_semantics = [#tpu.dimension_semantics<parallel>], iteration_bounds = array<i64: 2>, scalar_prefetch = 0 : i64, scratch_operands = 0 : i64, tpu.core_type = #tpu.core_type<tc>, window_params = [{transform_indices = @transform_0, window_bounds = array<i64: 8, 128>}, {pipeline_mode = #tpu.pipeline_mode<synchronous>, transform_indices = @transform_1, window_bounds = array<i64: 128, 128>}, {pipeline_mode = #tpu.pipeline_mode<synchronous>, transform_indices = @transform_2, window_bounds = array<i64: 1, 128>}, {transform_indices = @transform_3, window_bounds = array<i64: 8, 128>}]} {
    %c0 = arith.constant 0 : index
    %c0_0 = arith.constant 0 : index
    %0 = vector.load %arg1[%c0, %c0_0] : memref<8x128xf32, #tpu.memory_space<vmem>>, vector<8x128xf32>
    %c0_1 = arith.constant 0 : index
    %c0_2 = arith.constant 0 : index
    %1 = vector.load %arg2[%c0_1, %c0_2] : memref<128x128xf32, #tpu.memory_space<vmem>>, vector<128x128xf32>
    %cst = arith.constant dense<0.000000e+00> : vector<8x128xf32>
    %2 = tpu.matmul %0, %1, %cst {dimension_numbers = #tpu.dot_dimension_numbers<[1], [0], [0], [1], [0, 0, 1, 1], [], []>} : vector<8x128xf32>, vector<128x128xf32>, vector<8x128xf32> -> vector<8x128xf32>
    %c0_3 = arith.constant 0 : index
    %c0_4 = arith.constant 0 : index
    %3 = vector.load %arg3[%c0_3, %c0_4] : memref<1x128xf32, #tpu.memory_space<vmem>>, vector<1x128xf32>
    %4 = vector.broadcast %3 : vector<1x128xf32> to vector<8x128xf32>
    %5 = arith.addf %2, %4 : vector<8x128xf32>
    %c0_5 = arith.constant 0 : index
    %c0_6 = arith.constant 0 : index
    %6 = vector.load %arg4[%c0_5, %c0_6] : memref<8x128xf32, #tpu.memory_space<vmem>>, vector<8x128xf32>
    tpu.vector_store %arg4[%c0_5, %c0_6], %5 {strides = array<i32>} : memref<8x128xf32, #tpu.memory_space<vmem>>, vector<8x128xf32>,
    return
  }
  func.func @transform_0(%arg0: i32) -> (i32, i32) {
    %c0_i32 = arith.constant 0 : i32
    %c0_i32_0 = arith.constant 0 : i32
    return %arg0, %c0_i32 : i32, i32
  }
  func.func @transform_1(%arg0: i32) -> (i32, i32) {
    %c0_i32 = arith.constant 0 : i32
    %c0_i32_0 = arith.constant 0 : i32
    %c0_i32_1 = arith.constant 0 : i32
    return %c0_i32, %c0_i32_0 : i32, i32
  }
  func.func @transform_2(%arg0: i32) -> (i32, i32) {
    %c0_i32 = arith.constant 0 : i32
    %c0_i32_0 = arith.constant 0 : i32
    %c0_i32_1 = arith.constant 0 : i32
    return %c0_i32, %c0_i32_0 : i32, i32
  }
  func.func @transform_3(%arg0: i32) -> (i32, i32) {
    %c0_i32 = arith.constant 0 : i32
    %c0_i32_0 = arith.constant 0 : i32
    return %arg0, %c0_i32 : i32, i32
  }
}

</mosaic_0001>

<bundles_post_ra>
// kernel: tpu_custom_call.1
= control target key start
LH: loop header
LB: loop body
LE: loop exit
PB: predicated region body
PF: predicated region fallthrough
CT: control target
= control target key end

     0   :  { %6 = vsyncpa [#allocation3], 0  ;;  %s481_s0 = inlined_call_operand.hbm [shape: f32[8,128], index: 0, kind: input, shape index: {}]   ;;  %s482_s1 = inlined_call_operand.hbm [shape: f32[16,128], index: 1, kind: output, shape index: {}]  }
   0x1   :  { %7 = vsyncpa [#allocation4], 0 }
   0x2   :  { %9 = vsyncpa [#allocation4 + $0x1], 0  ;;  %s351_s6 = smov 0   ;;  %s353_s7 = smov 0  }
   0x3   :  { %s355_s8 = smov 0   ;;  %s357_s9 = smov 0  }
   0x4 LB: > { %s372_s10 = sadd.s32 4294967295, %s337_s9   ;;  %s183_s11 = sadd.s32 4294967294, %s337_s9   ;;  %s337_s9 = sphi %s357_s9, %s498_s9   ;;  %s333_s8 = sphi %s355_s8, %s497_s8   ;;  %s329_s7 = sphi %s353_s7, %s496_s7   ;;  %s325_s6 = sphi %s351_s6, %s495_s6  }
   0x5   : > { %s376_s12 = sadd.s32 1, %s337_s9   ;;  %s43_s13 = sadd.s32 1, %s333_s8 }
   0x6   : > { %s40_s14 = ssub.s32 %s337_s9, %s376_s12  ;;  %p53_p0 = scmp.ne.s32.totalorder %s333_s8, %s329_s7 }
   0x7   : > { %p41_p1 = scmp.eq.s32.totalorder %s40_s14, 0  ;;  %p54_p2 = scmp.eq.s32.totalorder %s372_s10, 1 }
   0x8   : > { %p59_p3 = scmp.ne.s32.totalorder %s329_s7, %s325_s6  ;;  %p60_p4 = scmp.eq.s32.totalorder %s183_s11, 1 }
   0x9   : > { %s387_s15 = scalar_select %p41_p1, %s333_s8, %s43_s13  }
   0xa   : > { %p389_p5 = por %p54_p2, %p53_p0  ;;  %p393_p6 = por %p60_p4, %p59_p3 }
   0xb   : > { %p184_p7 = scmp.ge.s32.totalorder %s337_s9, 1  ;;  %p67_p8 = scmp.lt.s32.totalorder %s337_s9, 3 }
   0xc   : > { %s486_s16 = scalar_select %p389_p5, 1, 0 }
   0xd   : > { %s487_s17 = scalar_select %p393_p6, 1, 0 }
   0xe   : > { %p483_p9 = scmp.eq.s32.totalorder %s372_s10, 0  ;;  %p400_p10 = pnand %p184_p7, %p67_p8 }
   0xf   : > { %s339_s19 = smov [#allocation2]   ;;  %s243_s24 = scalar_lea.hbm %s481_s0, 128 }
  0x10   : > { %s488_s18 = scalar_select %p400_p10, 1, 0 }
  0x11   : > { %s80_s20 = sshll.u32 %s339_s19, 4  ;;  %p199_p11 = pneg %p400_p10  ;;  %s81_s20 = int_to_ptr.vmem [resolvable:$true] %s80_s20 }
  0x12   : > { %p244_p13 = scmp.ne.s32.totalorder %s481_s0, %s243_s24  ;;  %p250_p3 = scmp.lt.u32.totalorder %s243_s24, %s481_s0 }
  0x13   : > { %p408_p12 = pnand %p483_p9, %p199_p11 }
  0x15   : > { %p245_p0 = pneg %p408_p12 }
  0x17   : > { %p246_p1 = pnand %p245_p0, %p244_p13 }
  0x19   : > { %p247_p2 = pneg %p246_p1 }
  0x1b   : > { %p252_p4 = pnand %p250_p3, %p247_p2 }
  0x1d   : > { %255 = shalt.err (!%p252_p4)
}
  0x1e   : > { %s256_s29 = scalar_lea.vmem %s81_s20, 128  ;;  %p264_p9 = scmp.lt.s32.totalorder %s81_s20, %s81_s20 }
  0x1f   : > { %p257_p7 = scmp.ne.s32.totalorder %s81_s20, %s256_s29  ;;  %p265_p6 = scmp.lt.s32.totalorder %s256_s29, %s256_s29 }
  0x21   : > { %p259_p8 = pnand %p257_p7, %p245_p0  ;;  %p266_p5 = por %p265_p6, %p264_p9 }
  0x23   : > { %p260_p11 = pneg %p259_p8 }
  0x25   : > { %p267_p10 = pnand %p266_p5, %p260_p11 }
  0x27   : > { %270 = shalt.err (!%p267_p10)
}
  0x28   : > { %202 = dma.hbm_to_vmem [thread:$0]  (!%p408_p12), %s481_s0, 128, %s81_s20, [#allocation3]  }
  0x29   : > { %p490_p13 = scmp.ne.s32.totalorder %s488_s18, 0 }
  0x2a   : > { %p491_p1 = scmp.eq.s32.totalorder (!%p490_p13), %s372_s10, 0 }
  0x2b   : > { %93 = sbr.rel (%p490_p13) target bundleno = 77 (0x4d), region = 24 }
  0x32   : > { %316 = dma.done.wait (%p491_p1), [#allocation3], 128   ;;  %p492_p0 = pmov %p491_p1 }
  0x33   : > { %s105_s3 = sand.u32 1, %s329_s7   ;;  %s190_s13 = sshll.u32 %s372_s10, 7  ;;  %v108_v0 = vld [vmem:[#allocation2] sm:$0xff] }
  0x34   : > { %318 = vsyncadd (%p492_p0), [#allocation3], 4294967168  ;;  %s188_s4 = sshll.u32 %s105_s3, 3  ;;  %s441_s18 = scalar_lea.hbm %s482_s1, %s190_s13 }
  0x35   : > { %s107_s5 = scalar_lea.vmem [#allocation5], %s188_s4  ;;  %s111_s20 = scalar_lea.sflag [#allocation4], %s105_s3 }
  0x36   : > { %s124_s11 = sshll.u32 %s107_s5, 4  ;;  %109 = vst [vmem:[%s107_s5] sm:$0xff] %v108_v0  ;;  %p493_p6 = scmp.ne.s32.totalorder %s486_s16, 0  ;;  %s436_s11 = int_to_ptr.vmem [resolvable:$true] %s124_s11 }
  0x37   : > { %s271_s21 = scalar_lea.vmem %s436_s11, 128  ;;  %s340_s22 = smov [#allocation5]  }
  0x38   : > { %p272_p5 = scmp.ne.s32.totalorder %s436_s11, %s271_s21  ;;  %s275_s10 = sshll.u32 %s340_s22, 4  ;;  %s276_s10 = int_to_ptr.vmem [resolvable:$false] %s275_s10 }
  0x39   : > { %s277_s23 = scalar_lea.vmem %s276_s10, 256  ;;  %p278_p12 = scmp.lt.s32.totalorder %s436_s11, %s276_s10 }
  0x3a   : > { %p273_p9 = pnand %p272_p5, %p493_p6  ;;  %p279_p2 = scmp.lt.s32.totalorder %s277_s23, %s271_s21 }
  0x3c   : > { %p274_p10 = pneg %p273_p9  ;;  %p280_p3 = por %p279_p2, %p278_p12 }
  0x3e   : > { %p281_p4 = pnand %p280_p3, %p274_p10 }
  0x40   : > { %284 = shalt.err (!%p281_p4)
}
  0x41   : > { %s285_s24 = scalar_lea.hbm %s441_s18, 128  ;;  %s289_s27 = scalar_lea.hbm %s482_s1, 256 }
  0x42   : > { %p286_p7 = scmp.ne.s32.totalorder %s441_s18, %s285_s24  ;;  %p290_p13 = scmp.lt.u32.totalorder %s441_s18, %s482_s1 }
  0x43   : > { %p291_p1 = scmp.lt.u32.totalorder %s289_s27, %s285_s24  ;;  %p293_p5 = scmp.lt.u32.totalorder %s285_s24, %s441_s18 }
  0x44   : > { %p287_p8 = pnand %p286_p7, %p493_p6 }
  0x45   : > { %p292_p0 = por %p291_p1, %p290_p13 }
  0x46   : > { %p288_p11 = pneg %p287_p8 }
  0x47   : > { %p294_p9 = por %p293_p5, %p292_p0 }
  0x49   : > { %p295_p10 = pnand %p294_p9, %p288_p11 }
  0x4b   : > { %298 = shalt.err (!%p295_p10)
}
  0x4c   : > { %197 = dma.vmem_to_hbm [thread:$0]  (%p493_p6), %s436_s11, 128, %s441_s18, %s111_s20  }
  0x4d PF: > { %p209_p12 = scmp.ge.s32.totalorder %s337_s9, 2  ;;  %s136_s30 = sand.u32 1, %s325_s6  }
  0x4e   : > { %p494_p2 = scmp.ne.s32.totalorder %s487_s17, 0  ;;  %s137_s2 = scalar_lea.sflag [#allocation4], %s136_s30 }
  0x50   : > { %p204_p3 = pnand %p209_p12, %p494_p2 }
  0x52   : > { %320 = dma.done.wait (!%p204_p3), %s137_s2, 128  }
  0x53   : > { %322 = vsyncadd (!%p204_p3), %s137_s2, 4294967168  ;;  %p12_p4 = scmp.ge.s32.totalorder %s376_s12, 4   ;;  %s495_s6 = smov %s329_s7 }
  0x54   : > { %s496_s7 = smov %s333_s8  ;;  %s497_s8 = smov %s387_s15 }
  0x55   : > { %s498_s9 = smov %s376_s12  ;;  %14 = sbr.rel (!%p12_p4) target bundleno = 4 (0x4), region = 61 }
  0x5c   :  { %142 = vsyncpa [#allocation3], 1 }
  0x5d   :  { %144 = vsyncpa [#allocation3 + $0x1], 1 }
  0x5e   :  { %145 = vsyncpa [#allocation4], 1 }
  0x5f   :  { %147 = vsyncpa [#allocation4 + $0x1], 1 }

// kernel: tpu_custom_call.1
= control target key start
LH: loop header
LB: loop body
LE: loop exit
PB: predicated region body
PF: predicated region fallthrough
CT: control target
= control target key end

     0   :  { %8 = vsyncpa [#allocation3], 0  ;;  %s907_s0 = inlined_call_operand.hbm [shape: f32[16,128], index: 0, kind: input, shape index: {}]   ;;  %s908_s1 = inlined_call_operand.hbm [shape: f32[128,128], index: 1, kind: input, shape index: {}]   ;;  %s909_s2 = inlined_call_operand.vmem [shape: f32[1,128], index: 2, kind: input, shape index: {}]   ;;  %s910_s3 = inlined_call_operand.hbm [shape: f32[16,128], index: 3, kind: output, shape index: {}]  }
   0x1   :  { %10 = vsyncpa [#allocation3 + $0x1], 0 }
   0x2   :  { %11 = vsyncpa [#allocation6], 0 }
   0x3   :  { %12 = vsyncpa [#allocation4], 0 }
   0x4   :  { %14 = vsyncpa [#allocation4 + $0x1], 0  ;;  %s701_s12 = smov 0   ;;  %s703_s13 = smov 0  }
   0x5   :  { %s705_s14 = smov 0   ;;  %s707_s15 = smov 0  }
   0x6 LB: > { %s722_s16 = sadd.s32 4294967295, %s671_s15   ;;  %s390_s17 = sadd.s32 4294967294, %s671_s15   ;;  %s671_s15 = sphi %s707_s15, %s930_s15   ;;  %s667_s14 = sphi %s705_s14, %s929_s14   ;;  %s663_s13 = sphi %s703_s13, %s928_s13   ;;  %s659_s12 = sphi %s701_s12, %s927_s12  }
   0x7   : > { %p40_p0 = scmp.ne.s32.totalorder %s663_s13, %s659_s12  ;;  %p911_p1 = scmp.eq.s32.totalorder %s722_s16, 0 }
   0x8   : > { %p112_p3 = scmp.eq.s32.totalorder %s390_s17, 1  ;;  %p391_p5 = scmp.ge.s32.totalorder %s671_s15, 1 }
   0x9   : > { %p731_p4 = por %p911_p1, %p40_p0  ;;  %p119_p7 = scmp.lt.s32.totalorder %s671_s15, 3 }
   0xa   : > { %p736_p6 = por %p112_p3, %p40_p0  ;;  %s673_s21 = smov [#allocation5]  }
   0xb   : > { %s914_s18 = scalar_select %p731_p4, 1, 0 }
   0xc   : > { %s915_s19 = scalar_select %p736_p6, 1, 0 }
   0xd   : > { %p741_p8 = pnand %p391_p5, %p119_p7  ;;  %s131_s22 = sshll.u32 %s673_s21, 4  ;;  %s745_s22 = int_to_ptr.vmem [resolvable:$true] %s131_s22 }
   0xe   : > { %s757_s24 = sadd.s32 1, %s671_s15   ;;  %s27_s25 = sadd.s32 1, %s667_s14 }
   0xf   : > { %s916_s20 = scalar_select %p741_p8, 1, 0 }
  0x10   : > { %p489_p9 = pneg %p741_p8  ;;  %s24_s26 = ssub.s32 %s671_s15, %s757_s24 }
  0x11   : > { %s543_s29 = scalar_lea.hbm %s908_s1, 2048 }
  0x12   : > { %p752_p11 = pnand %p489_p9, %p911_p1  ;;  %p544_p12 = scmp.ne.s32.totalorder %s908_s1, %s543_s29 }
  0x13   : > { %p550_p5 = scmp.lt.u32.totalorder %s543_s29, %s908_s1 }
  0x14   : > { %p545_p13 = pneg %p752_p11 }
  0x16   : > { %p546_p0 = pnand %p545_p13, %p544_p12 }
  0x18   : > { %p547_p3 = pneg %p546_p0 }
  0x1a   : > { %p552_p7 = pnand %p550_p5, %p547_p3 }
  0x1c   : > { %555 = shalt.err (!%p552_p7)
}
  0x1d   : > { %s556_s7 = scalar_lea.vmem %s745_s22, 2048  ;;  %p564_p2 = scmp.lt.s32.totalorder %s745_s22, %s745_s22 }
  0x1e   : > { %p557_p9 = scmp.ne.s32.totalorder %s745_s22, %s556_s7  ;;  %p565_p6 = scmp.lt.s32.totalorder %s556_s7, %s556_s7 }
  0x20   : > { %p559_p10 = pnand %p557_p9, %p545_p13  ;;  %p566_p4 = por %p565_p6, %p564_p2 }
  0x22   : > { %p560_p1 = pneg %p559_p10 }
  0x24   : > { %p567_p8 = pnand %p566_p4, %p560_p1 }
  0x26   : > { %570 = shalt.err (!%p567_p8)
}
  0x27   : > { %s674_s8 = smov 128   ;;  %s675_s9 = smov 8  }
  0x28   : > { %492 = dma.hbm_to_vmem [thread:$0]  (!%p752_p11), %s908_s1, 2048, %s745_s22, [#allocation6], %s674_s8, %s674_s8, %s675_s9  }
  0x29   : > { %p25_p2 = scmp.eq.s32.totalorder %s24_s26, 0  ;;  %p34_p1 = scmp.ne.s32.totalorder %s667_s14, %s663_s13 }
  0x2a   : > { %p35_p4 = scmp.eq.s32.totalorder %s671_s15, 0  ;;  %p502_p6 = scmp.lt.s32.totalorder %s671_s15, 2 }
  0x2b   : > { %s788_s17 = scalar_select %p25_p2, %s667_s14, %s27_s25  }
  0x2c   : > { %p36_p8 = por %p35_p4, %p34_p1  ;;  %p918_p10 = scmp.eq.s32.totalorder %s722_s16, 1 }
  0x2d   : > { %s148_s27 = sand.u32 1, %s667_s14   ;;  %s395_s28 = sshll.u32 %s671_s15, 7 }
  0x2e   : > { %p792_p12 = por %p918_p10, %p34_p1  ;;  %s394_s29 = sshll.u32 %s148_s27, 3 }
  0x2f   : > { %s801_s4 = scalar_lea.hbm %s907_s0, %s395_s28  ;;  %s152_s22 = scalar_lea.vmem [#allocation2], %s394_s29 }
  0x30   : > { %s159_s25 = sshll.u32 %s152_s22, 4  ;;  %p803_p11 = pnand %p502_p6, %p36_p8  ;;  %s807_s25 = int_to_ptr.vmem [resolvable:$true] %s159_s25 }
  0x31   : > { %s149_s5 = scalar_lea.sflag [#allocation3], %s148_s27  ;;  %s571_s6 = scalar_lea.hbm %s801_s4, 128 }
  0x32   : > { %p572_p13 = scmp.ne.s32.totalorder %s801_s4, %s571_s6  ;;  %p573_p0 = pneg %p803_p11 }
  0x33   : > { %s576_s9 = scalar_lea.hbm %s907_s0, 256  ;;  %p577_p7 = scmp.lt.u32.totalorder %s801_s4, %s907_s0 }
  0x34   : > { %p574_p3 = pnand %p573_p0, %p572_p13  ;;  %p578_p9 = scmp.lt.u32.totalorder %s576_s9, %s571_s6 }
  0x35   : > { %p580_p1 = scmp.lt.u32.totalorder %s571_s6, %s801_s4 }
  0x36   : > { %p575_p5 = pneg %p574_p3  ;;  %p579_p2 = por %p578_p9, %p577_p7 }
  0x38   : > { %p581_p4 = por %p580_p1, %p579_p2 }
  0x3a   : > { %p582_p6 = pnand %p581_p4, %p575_p5 }
  0x3c   : > { %585 = shalt.err (!%p582_p6)
}
  0x3d   : > { %s586_s27 = scalar_lea.vmem %s807_s25, 128  ;;  %s676_s28 = smov [#allocation2]  }
  0x3e   : > { %p587_p8 = scmp.ne.s32.totalorder %s807_s25, %s586_s27  ;;  %s591_s29 = sshll.u32 %s676_s28, 4  ;;  %s592_s29 = int_to_ptr.vmem [resolvable:$false] %s591_s29 }
  0x3f   : > { %s593_s23 = scalar_lea.vmem %s592_s29, 256  ;;  %p594_p3 = scmp.lt.s32.totalorder %s807_s25, %s592_s29 }
  0x40   : > { %p589_p10 = pnand %p587_p8, %p573_p0  ;;  %p595_p7 = scmp.lt.s32.totalorder %s593_s23, %s586_s27 }
  0x42   : > { %p590_p13 = pneg %p589_p10  ;;  %p596_p9 = por %p595_p7, %p594_p3 }
  0x44   : > { %p597_p2 = pnand %p596_p9, %p590_p13 }
  0x46   : > { %600 = shalt.err (!%p597_p2)
}
  0x47   : > { %496 = dma.hbm_to_vmem [thread:$0]  (!%p803_p11), %s801_s4, 128, %s807_s25, %s149_s5  }
  0x48   : > { %p921_p5 = scmp.ne.s32.totalorder %s916_s20, 0 }
  0x49   : > { %s837_s30 = sand.u32 (!%p921_p5), 1, %s663_s13   ;;  %p922_p0 = scmp.ne.s32.totalorder (!%p921_p5), %s914_s18, 0 }
  0x4a   : > { %168 = sbr.rel (%p921_p5) target bundleno = 347 (0x15b), region = 32  ;;  %s397_s22 = sshll.u32 (!%p921_p5), %s837_s30, 3 }
  0x4b   : > { %s171_s6 = scalar_lea.sflag (!%p921_p5), [#allocation3], %s837_s30  ;;  %s843_s7 = scalar_lea.vmem (!%p921_p5), [#allocation2], %s397_s22 }
  0x51   : > { %646 = dma.done.wait (%p922_p0), %s171_s6, 128  }
  0x52   : > { %648 = vsyncadd (%p922_p0), %s171_s6, 4294967168  ;;  %p923_p11 = scmp.eq.s32.totalorder %s722_s16, 0 }
  0x54   : > { %650 = dma.done.wait (%p923_p11), [#allocation6], 2048   ;;  %p924_p1 = pmov %p923_p11 }
  0x55   : > { %v677_v0 = vmov 0.0|0.0   ;;  %vm678_vm0 = vmmov 0   ;;  %v679_v1 = vmov 0.0   ;;  %v202_v2 = vld [vmem:[#allocation5] sm:$0xff]  ;;  %v203_v3 = vld [vmem:[#allocation5 + $0x8] sm:$0xff]  ;;  %v204_v4 = vld [vmem:[#allocation5 + $0x10] sm:$0xff] }
  0x56   : > { %652 = vsyncadd (%p924_p1), [#allocation6], 4294965248  ;;  %457 = vmatprep.subr.bf16.mxu0 %v677_v0  ;;  %454 = vmatprep.mubr.msk.f32.mxu0 %vm678_vm0, %v679_v1  ;;  %v458_v5 = vpack.c.bf16 %v203_v3, %v202_v2  ;;  %v205_v6 = vld [vmem:[#allocation5 + $0x18] sm:$0xff]  ;;  %v206_v8 = vld [vmem:[#allocation5 + $0x20] sm:$0xff]  ;;  %s402_s4 = sshll.u32 %s722_s16, 7  ;;  %s200_s25 = scalar_lea.vmem [#allocation7], %s397_s22 }
  0x57   : > { %v461_v7 = vpack.c.bf16 %v205_v6, %v204_v4  ;;  %v207_v9 = vld [vmem:[#allocation5 + $0x28] sm:$0xff]  ;;  %v208_v11 = vld [vmem:[#allocation5 + $0x30] sm:$0xff]  ;;  %v209_v12 = vld [vmem:[#allocation5 + $0x38] sm:$0xff]  ;;  %s310_s26 = sshll.u32 %s200_s25, 4  ;;  %s863_s9 = scalar_lea.hbm %s910_s3, %s402_s4  ;;  %s865_s26 = int_to_ptr.vmem [resolvable:$true] %s310_s26 }
  0x58   : > { %459 = vmatpush3.bf16.msra.mxu0 %v458_v5  ;;  %v464_v10 = vpack.c.bf16 %v207_v9, %v206_v8  ;;  %v467_v13 = vpack.c.bf16 %v209_v12, %v208_v11  ;;  %v210_v14 = vld [vmem:[#allocation5 + $0x40] sm:$0xff]  ;;  %v211_v15 = vld [vmem:[#allocation5 + $0x48] sm:$0xff]  ;;  %v212_v17 = vld [vmem:[#allocation5 + $0x50] sm:$0xff]  ;;  %s297_s10 = scalar_lea.sflag [#allocation4], %s837_s30  ;;  %s601_s11 = scalar_lea.vmem %s865_s26, 128 }
  0x59   : > { %460 = vmatprep.subr.bf16.mxu0 %v677_v0  ;;  %v470_v16 = vpack.c.bf16 %v211_v15, %v210_v14  ;;  %v213_v18 = vld [vmem:[#allocation5 + $0x58] sm:$0xff]  ;;  %v214_v20 = vld [vmem:[#allocation5 + $0x60] sm:$0xff]  ;;  %v215_v21 = vld [vmem:[#allocation5 + $0x68] sm:$0xff]  ;;  %p602_p4 = scmp.ne.s32.totalorder %s865_s26, %s601_s11  ;;  %s680_s16 = smov [#allocation7]  }
  0x5a   : > { %v473_v19 = vpack.c.bf16 %v213_v18, %v212_v17  ;;  %v476_v22 = vpack.c.bf16 %v215_v21, %v214_v20  ;;  %v216_v23 = vld [vmem:[#allocation5 + $0x70] sm:$0xff]  ;;  %v217_v24 = vld [vmem:[#allocation5 + $0x78] sm:$0xff]  ;;  %s605_s27 = sshll.u32 %s680_s16, 4  ;;  %s606_s27 = int_to_ptr.vmem [resolvable:$false] %s605_s27 }
  0x5b   : > { %v479_v25 = vpack.c.bf16 %v217_v24, %v216_v23  ;;  %v201_v26 = vld [vmem:[%s843_s7] sm:$0xff]  ;;  %p603_p6 = pnand %p602_p4, %p792_p12  ;;  %s607_s28 = scalar_lea.vmem %s606_s27, 256 }
  0x5c   : > { %462 = vmatpush3.bf16.msra.mxu0 %v461_v7  ;;  %v400_v27 = vld [vmem:[%s909_s2] ss:$0 sm:$0xff]  ;;  %p608_p10 = scmp.lt.s32.totalorder %s865_s26, %s606_s27  ;;  %p609_p13 = scmp.lt.s32.totalorder %s607_s28, %s601_s11 }
  0x5d   : > { %463 = vmatprep.subr.bf16.mxu0 %v677_v0  ;;  %p604_p8 = pneg %p603_p6 }
  0x5e   : > { %p610_p3 = por %p609_p13, %p608_p10 }
  0x60   : > { %465 = vmatpush3.bf16.msra.mxu0 %v464_v10  ;;  %p611_p7 = pnand %p610_p3, %p604_p8 }
  0x61   : > { %466 = vmatprep.subr.bf16.mxu0 %v677_v0 }
  0x64   : > { %468 = vmatpush3.bf16.msra.mxu0 %v467_v13 }
  0x65   : > { %469 = vmatprep.subr.bf16.mxu0 %v677_v0 }
  0x68   : > { %471 = vmatpush3.bf16.msra.mxu0 %v470_v16 }
  0x69   : > { %472 = vmatprep.subr.bf16.mxu0 %v677_v0 }
  0x6c   : > { %474 = vmatpush3.bf16.msra.mxu0 %v473_v19 }
  0x6d   : > { %475 = vmatprep.subr.bf16.mxu0 %v677_v0 }
  0x70   : > { %477 = vmatpush3.bf16.msra.mxu0 %v476_v22 }
  0x71   : > { %478 = vmatprep.subr.bf16.mxu0 %v677_v0 }
  0x74   : > { %480 = vmatpush3.bf16.msra.mxu0 %v479_v25 }
  0x77   : > { %455 = vmatmul.mubr.f32.vlgmr.msra.gmra.mrb[0].mxu0 %v201_v26 }
 0x14a   : > { %v291_v28 = vpop.f32.mrb[0].mxu0 }
 0x14b   : > { %v292_v29 = vadd.f32 %v400_v27, %v291_v28  ;;  %v456_v30 = vpop.f32.mrb[1].mxu0 }
 0x14d   : > { %295 = vst [vmem:[%s200_s25] sm:$0xff] %v292_v29 }
 0x14e   : > { %614 = shalt.err (!%p611_p7)
}
 0x14f   : > { %s615_s29 = scalar_lea.hbm %s863_s9, 128  ;;  %s619_s22 = scalar_lea.hbm %s910_s3, 256 }
 0x150   : > { %p616_p9 = scmp.ne.s32.totalorder %s863_s9, %s615_s29  ;;  %p620_p0 = scmp.lt.u32.totalorder %s863_s9, %s910_s3 }
 0x151   : > { %p621_p11 = scmp.lt.u32.totalorder %s619_s22, %s615_s29  ;;  %p623_p4 = scmp.lt.u32.totalorder %s615_s29, %s863_s9 }
 0x152   : > { %p617_p2 = pnand %p616_p9, %p792_p12 }
 0x153   : > { %p622_p1 = por %p621_p11, %p620_p0 }
 0x154   : > { %p618_p5 = pneg %p617_p2 }
 0x155   : > { %p624_p6 = por %p623_p4, %p622_p1 }
 0x157   : > { %p625_p8 = pnand %p624_p6, %p618_p5 }
 0x159   : > { %628 = shalt.err (!%p625_p8)
}
 0x15a   : > { %487 = dma.vmem_to_hbm [thread:$0]  (%p792_p12), %s865_s26, 128, %s863_s9, %s297_s10  }
 0x15b PF: > { %s322_s18 = sand.u32 1, %s659_s12   ;;  %p925_p10 = scmp.ne.s32.totalorder %s915_s19, 0 }
 0x15c   : > { %p926_p13 = scmp.ge.s32.totalorder %s671_s15, 2  ;;  %s323_s20 = scalar_lea.sflag [#allocation4], %s322_s18 }
 0x15e   : > { %p498_p3 = pnand %p926_p13, %p925_p10 }
 0x160   : > { %654 = dma.done.wait (!%p498_p3), %s323_s20, 128  }
 0x161   : > { %656 = vsyncadd (!%p498_p3), %s323_s20, 4294967168  ;;  %p17_p7 = scmp.ge.s32.totalorder %s757_s24, 4   ;;  %s927_s12 = smov %s663_s13 }
 0x162   : > { %s928_s13 = smov %s667_s14  ;;  %s929_s14 = smov %s788_s17 }
 0x163   : > { %s930_s15 = smov %s757_s24  ;;  %19 = sbr.rel (!%p17_p7) target bundleno = 6 (0x6), region = 81 }
 0x16a   :  { %328 = vsyncpa [#allocation3], 1 }
 0x16b   :  { %330 = vsyncpa [#allocation3 + $0x1], 1 }
 0x16c   :  { %331 = vsyncpa [#allocation6], 1 }
 0x16d   :  { %332 = vsyncpa [#allocation4], 1 }
 0x16e   :  { %334 = vsyncpa [#allocation4 + $0x1], 1 }

</bundles_post_ra>
